<compile_context>
chip_gen: v6e
topology: v6e:2x2x1
jax: 0.10.0
libtpu: 0.0.40
codegen_flags: <defaults>
</compile_context>

<pallas_src>
import jax
import jax.numpy as jnp
from jax.experimental import pallas as pl
from jax.experimental.pallas import tpu as pltpu


def _selector_kernel(x_ref, w_ref, o_ref):
    w = w_ref[...]                               # (Y, X) f32 selector logits
    Y, X = w.shape

    # argmax of logits == argmax of softmax(logits); first-max tie-break like torch.
    amax = jnp.argmax(w, axis=1)                 # (Y,) int32

    # Build the hard one-hot mask already transposed: hard_t[x, y] = (x == amax[y]).
    # bf16 is exact for {0, 1} values.
    row = jax.lax.broadcasted_iota(jnp.int32, (X, Y), 0)
    hard_t = (row == amax[None, :]).astype(jnp.bfloat16)   # (X, Y)

    # out = F.linear(x, mask) = x @ mask.T = x @ hard_t   -> (B, Y)
    # Inputs are binary 0/1 per the module contract, so bf16 operands with an
    # f32 accumulator are exact.
    xb = x_ref[...].astype(jnp.bfloat16)
    out = jnp.dot(xb, hard_t, preferred_element_type=jnp.float32)
    o_ref[...] = out.astype(o_ref.dtype)


def sparse_btnn_selector_forward(x, weight):
    """x: (B, X) float32 (binary 0/1), weight: (Y, X) float32 -> (B, Y) float32."""
    B, X = x.shape
    Y, Xw = weight.shape
    assert X == Xw
    return pl.pallas_call(
        _selector_kernel,
        out_shape=jax.ShapeDtypeStruct((B, Y), jnp.float32),
        in_specs=[
            pl.BlockSpec(memory_space=pltpu.MemorySpace.VMEM),
            pl.BlockSpec(memory_space=pltpu.MemorySpace.VMEM),
        ],
        out_specs=pl.BlockSpec(memory_space=pltpu.MemorySpace.VMEM),
    )(x, weight)


def xavier_uniform(key, shape):
    fan_out, fan_in = shape  # torch Linear weight: (out_features, in_features)
    bound = jnp.sqrt(6.0 / (fan_in + fan_out))
    return jax.random.uniform(key, shape, jnp.float32, -bound, bound)


if __name__ == "__main__":
    key = jax.random.PRNGKey(0)
    k_w, k_x = jax.random.split(key)

    in_features = 32    # x
    out_features = 16   # y
    batch = 8

    # deterministic xavier-uniform weight, binary (0/1) inputs
    weight = xavier_uniform(k_w, (out_features, in_features))
    x = jax.random.bernoulli(k_x, 0.5, (batch, in_features)).astype(jnp.float32)

    out = jax.block_until_ready(sparse_btnn_selector_forward(x, weight))

    # references in plain JAX
    s = jax.nn.softmax(weight, axis=1)
    hard = jax.nn.one_hot(jnp.argmax(s, axis=1), in_features, dtype=jnp.float32)
    ref_hard = x @ hard.T                 # exact forward value of the hard mask
    ref_st = x @ ((hard - s) + s).T       # torch's numerical composition

    assert out.shape == (batch, out_features)
    assert jnp.allclose(out, ref_hard), "mismatch vs hard-mask reference"
    assert jnp.allclose(out, ref_st, atol=1e-5), "mismatch vs straight-through reference"
    # check_binary_tensor equivalent — exact because the forward mask is the hard one-hot
    assert bool(jnp.all((out == 0) | (out == 1))), "selector output not binary"

    print("KERNEL_OK")
</pallas_src>

<mosaic_0001>
module attributes {stable_mosaic.version = 11 : i64} {
  func.func @_selector_kernel(%arg0: memref<8x32xf32, #tpu.memory_space<vmem>>, %arg1: memref<16x32xf32, #tpu.memory_space<vmem>>, %arg2: memref<8x16xf32, #tpu.memory_space<vmem>>) attributes {dimension_semantics = [], scalar_prefetch = 0 : i64, scratch_operands = 0 : i64, tpu.core_type = #tpu.core_type<tc>} {
    %c0 = arith.constant 0 : index
    %c0_0 = arith.constant 0 : index
    %0 = vector.load %arg1[%c0, %c0_0] : memref<16x32xf32, #tpu.memory_space<vmem>>, vector<16x32xf32>
    %1 = tpu.reduce_index %0 {axis = 1 : i32, kind = #tpu.reduction_kind<arg_max>} : vector<16x32xf32> -> vector<16xi32>
    %2 = tpu.iota {dimensions = array<i32: 0>} : vector<32x16xi32>
    %3 = vector.shape_cast %1 : vector<16xi32> to vector<1x16xi32>
    %4 = vector.broadcast %3 : vector<1x16xi32> to vector<32x16xi32>
    %5 = arith.cmpi eq, %2, %4 : vector<32x16xi32>
    %6 = arith.extui %5 : vector<32x16xi1> to vector<32x16xi32>
    %7 = arith.sitofp %6 : vector<32x16xi32> to vector<32x16xf32>
    %8 = arith.truncf %7 : vector<32x16xf32> to vector<32x16xbf16>
    %c0_1 = arith.constant 0 : index
    %c0_2 = arith.constant 0 : index
    %9 = vector.load %arg0[%c0_1, %c0_2] : memref<8x32xf32, #tpu.memory_space<vmem>>, vector<8x32xf32>
    %10 = arith.truncf %9 : vector<8x32xf32> to vector<8x32xbf16>
    %cst = arith.constant dense<0.000000e+00> : vector<8x16xf32>
    %11 = tpu.matmul %10, %8, %cst {dimension_numbers = #tpu.dot_dimension_numbers<[1], [0], [0], [1], [0, 0, 1, 1], [], []>} : vector<8x32xbf16>, vector<32x16xbf16>, vector<8x16xf32> -> vector<8x16xf32>
    %c0_3 = arith.constant 0 : index
    %c0_4 = arith.constant 0 : index
    %12 = vector.load %arg2[%c0_3, %c0_4] : memref<8x16xf32, #tpu.memory_space<vmem>>, vector<8x16xf32>
    tpu.vector_store %arg2[%c0_3, %c0_4], %11 {strides = array<i32>} : memref<8x16xf32, #tpu.memory_space<vmem>>, vector<8x16xf32>,
    return
  }
}

</mosaic_0001>

<bundles_post_ra>
// kernel: tpu_custom_call.1
= control target key start
LH: loop header
LB: loop body
LE: loop exit
PB: predicated region body
PF: predicated region fallthrough
CT: control target
= control target key end

     0   :  { %7 = vsyncpa [#allocation3], 0  ;;  %s284_s0 = inlined_call_operand.hbm [shape: f32[8,32], index: 0, kind: input, shape index: {}]   ;;  %s285_s1 = inlined_call_operand.hbm [shape: f32[16,32], index: 1, kind: input, shape index: {}]   ;;  %s286_s2 = inlined_call_operand.hbm [shape: f32[8,16], index: 2, kind: output, shape index: {}]  }
   0x1   :  { %8 = vsyncpa [#allocation6], 0 }
   0x2   :  { %9 = vsyncpa [#allocation4], 0  ;;  %s249_s9 = smov [#allocation2]   ;;  %s250_s11 = smov [#allocation5]  }
   0x3   :  { %s16_s10 = sshll.u32 %s249_s9, 4  ;;  %s25_s12 = sshll.u32 %s250_s11, 4  ;;  %s17_s10 = int_to_ptr.vmem [resolvable:$true] %s16_s10  ;;  %s26_s12 = int_to_ptr.vmem [resolvable:$true] %s25_s12 }
   0x4   :  { %s191_s13 = scalar_lea.vmem %s17_s10, 128  ;;  %p196_p1 = scmp.lt.s32.totalorder %s17_s10, %s17_s10 }
   0x5   :  { %p192_p0 = scmp.ne.s32.totalorder %s17_s10, %s191_s13  ;;  %p197_p2 = scmp.lt.s32.totalorder %s191_s13, %s191_s13 }
   0x7   :  { %p198_p3 = por %p197_p2, %p196_p1 }
   0x9   :  { %p199_p4 = pnand %p198_p3, %p192_p0 }
   0xb   :  { %202 = shalt.err (!%p199_p4)
}
   0xc   :  { %19 = dma.hbm_to_vmem [thread:$0]  %s284_s0, 128, %s17_s10, [#allocation3]  }
   0xd   :  { %s211_s16 = scalar_lea.vmem %s26_s12, 256  ;;  %p216_p6 = scmp.lt.s32.totalorder %s26_s12, %s26_s12 }
   0xe   :  { %p212_p5 = scmp.ne.s32.totalorder %s26_s12, %s211_s16  ;;  %p217_p7 = scmp.lt.s32.totalorder %s211_s16, %s211_s16 }
  0x10   :  { %p218_p8 = por %p217_p7, %p216_p6 }
  0x12   :  { %p219_p9 = pnand %p218_p8, %p212_p5 }
  0x14   :  { %222 = shalt.err (!%p219_p9)
}
  0x15   :  { %s251_s17 = smov 128   ;;  %s252_s18 = smov 8  }
  0x16   :  { %31 = dma.hbm_to_vmem [thread:$0]  %s285_s1, 256, %s26_s12, [#allocation6], %s251_s17, %s251_s17, %s252_s18  }
  0x17   :  { %243 = dma.done.wait [#allocation3], 128  }
  0x18   :  { %244 = vsyncadd [#allocation3], 4294967168 }
  0x19   :  { %245 = dma.done.wait [#allocation6], 256  }
  0x1a   :  { %246 = vsyncadd [#allocation6], 4294967040  ;;  %vm41_vm0 = vcmask 261120   ;;  %v39_v0 = vld [vmem:[#allocation5] sm:$0xff]  ;;  %v40_v1 = vld [vmem:[#allocation5 + $0x8] sm:$0xff]  ;;  %v253_v4 = vmov 0.0   ;;  %v48_v5 = vlaneseq }
  0x1b   :  { %v42_v2 = vsel %vm41_vm0, %v39_v0, -inf  ;;  %v45_v3 = vsel %vm41_vm0, %v40_v1, -inf  ;;  %167 = vmatprep.subr.bf16.mxu0 %v253_v4  ;;  %vm254_vm1 = vmmov 0   ;;  %vm64_vm2 = vcmask 130112   ;;  %v92_v20 = vld [vmem:[#allocation2] sm:$0xff]  ;;  %s256_s0 = smov [#allocation7]  }
  0x1c   :  { %43 = vmax.index.xlane.f32.xlu0 %v42_v2  ;;  %171 = vmatprep.mubr.msk.bf16.mxu0 %vm254_vm1, %v253_v4  ;;  %v54_v6 = vand.u32 127, %v48_v5  ;;  %v49_v7 = vshrl.u32 %v48_v5, 7  ;;  %v255_v19 = vmov 1.0|1.0   ;;  %v93_v21 = vpack.c.bf16 %v92_v20, %v92_v20  ;;  %s145_s1 = sshll.u32 %s256_s0, 4  ;;  %s146_s1 = int_to_ptr.vmem [resolvable:$true] %s145_s1 }
  0x1d   :  { %vm137_vm9 = vcmask 130048   ;;  %s223_s21 = scalar_lea.vmem %s146_s1, 128  ;;  %p228_p11 = scmp.lt.s32.totalorder %s146_s1, %s146_s1 }
  0x1e   :  { %v59_v8 = vadd.s32 4294967288, %v54_v6  ;;  %v57_v10 = vsub.s32 %v54_v6, %v49_v7  ;;  %v51_v13 = vadd.s32 16, %v49_v7  ;;  %v52_v14 = vadd.s32 24, %v49_v7  ;;  %p224_p10 = scmp.ne.s32.totalorder %s146_s1, %s223_s21  ;;  %p229_p12 = scmp.lt.s32.totalorder %s223_s21, %s223_s21 }
  0x1f   :  { %v50_v17 = vadd.s32 8, %v49_v7 }
  0x20   :  { %46 = vmax.index.xlane.f32.xlu0 %v45_v3  ;;  %v62_v11 = vsub.s32 %v59_v8, %v49_v7  ;;  %p230_p13 = por %p229_p12, %p228_p11 }
  0x22   :  { %p231_p0 = pnand %p230_p13, %p224_p10 }
  0xa5   :  { %v44_v9 = vpop.xlane.xlu0 %43 }
  0xa6   :  { %v58_v15 = vrot.slane %v44_v9, %v57_v10 }
  0xa9   :  { %v47_v12 = vpop.xlane.xlu0 %46 }
  0xaa   :  { %v63_v16 = vrot.slane %v47_v12, %v62_v11 }
  0xac   :  { %v65_v18 = vsel %vm64_vm2, %v63_v16, %v58_v15 }
  0xad   :  { %vm80_vm3 = vcmp.eq.s32.totalorder %v51_v13, %v65_v18  ;;  %vm81_vm4 = vcmp.eq.s32.totalorder %v52_v14, %v65_v18  ;;  %vm78_vm6 = vcmp.eq.s32.totalorder %v49_v7, %v65_v18  ;;  %vm79_vm7 = vcmp.eq.s32.totalorder %v50_v17, %v65_v18 }
  0xae   :  { %vm159_vm5 = vmpackc.low %vm81_vm4, %vm80_vm3 }
  0xaf   :  { %168 = vmatpush3.bf16.msk.msra.mxu0 %vm159_vm5, %v255_v19  ;;  %vm161_vm8 = vmpackc.low %vm79_vm7, %vm78_vm6 }
  0xb0   :  { %169 = vmatprep.subr.bf16.mxu0 %v253_v4 }
  0xb3   :  { %170 = vmatpush3.bf16.msk.msra.mxu0 %vm161_vm8, %v255_v19 }
  0xb6   :  { %172 = vmatmul.mubr.msk.bf16.vlgmr.msra.gmra.mxu0 %vm41_vm0, %v93_v21 }
 0x176   :  { %v131_v22 = vpop.f32.mrf.mxu0 }
 0x177   :  { %138 = vst.msk [vmem:[#allocation7] sm:$0xff] %vm137_vm9, %v131_v22 }
 0x178   :  { %v173_v23 = vpop.f32.mrf.mxu0 }
 0x179   :  { %234 = shalt.err (!%p231_p0)
}
 0x17a   :  { %148 = dma.vmem_to_hbm [thread:$0]  %s146_s1, 128, %s286_s2, [#allocation4]   ;;  %v134_v24 = vpop.f32.mrf.mxu0 }
 0x17c   :  { %v174_v25 = vpop.f32.mrf.mxu0 }
 0x17d   :  { %247 = dma.done.wait [#allocation4], 128  }
 0x17e   :  { %248 = vsyncadd [#allocation4], 4294967168 }
 0x17f   :  { %152 = vsyncpa [#allocation3], 1 }
 0x180   :  { %153 = vsyncpa [#allocation6], 1 }
 0x181   :  { %154 = vsyncpa [#allocation4], 1 }

</bundles_post_ra>
